<compile_context>
chip_gen: v6e
topology: v6e:2x2x1
jax: 0.10.0
libtpu: 0.0.40
codegen_flags: <defaults>
</compile_context>

<pallas_src>
import math
import functools

import jax
import jax.numpy as jnp
from jax.experimental import pallas as pl
from jax.experimental.pallas import tpu as pltpu


def _clip_loss_kernel(scale_ref,            # SMEM (1,) f32
                      img_ref, txt_ref,     # VMEM (B, D) — resident, full blocks
                      loss_ref,             # SMEM (1,) f32 output
                      li_ref, lt_ref,       # VMEM (TB, B) logits tiles
                      acc_ref,              # SMEM (1,) f32 scratch accumulator
                      *, tile_rows, batch):
    i = pl.program_id(0)
    row0 = pl.multiple_of(i * tile_rows, tile_rows)

    scale = scale_ref[0]

    img_all = img_ref[...]                                    # [B, D]
    txt_all = txt_ref[...]                                    # [B, D]

    # Fold logit_scale into the row tiles once (instead of scaling both logits).
    img_tile = img_ref[pl.ds(row0, tile_rows), :] * scale     # [TB, D]
    txt_tile = txt_ref[pl.ds(row0, tile_rows), :] * scale     # [TB, D]

    # Lane-dense MXU matmuls: output lane axis == full batch B.
    li = jnp.einsum("md,nd->mn", img_tile, txt_all,
                    preferred_element_type=jnp.float32)       # [TB, B]
    lt = jnp.einsum("md,nd->mn", txt_tile, img_all,
                    preferred_element_type=jnp.float32)       # [TB, B]

    li_ref[...] = li.astype(li_ref.dtype)
    lt_ref[...] = lt.astype(lt_ref.dtype)

    # labels = arange(B): target column of global row (row0 + r) is (row0 + r).
    col = jax.lax.broadcasted_iota(jnp.int32, (tile_rows, batch), 1)
    row = jax.lax.broadcasted_iota(jnp.int32, (tile_rows, batch), 0) + row0
    dmask = col == row

    def ce_rowsum(logits):
        m = jnp.max(logits, axis=-1, keepdims=True)
        lse = m + jnp.log(jnp.sum(jnp.exp(logits - m), axis=-1, keepdims=True))
        target = jnp.sum(jnp.where(dmask, logits, 0.0), axis=-1, keepdims=True)
        return jnp.sum(lse - target)

    partial = ce_rowsum(li) + ce_rowsum(lt)

    @pl.when(i == 0)
    def _():
        acc_ref[0] = 0.0

    acc_ref[0] += partial

    @pl.when(i == pl.num_programs(0) - 1)
    def _():
        # mean over B rows for each direction, then average the two directions.
        loss_ref[0] = acc_ref[0] * (0.5 / batch)


def clip_loss_pallas(image_features, text_features, logit_scale):
    """image_features, text_features: [B, D].  Returns (loss, logits_i, logits_t)."""
    B, D = image_features.shape
    assert text_features.shape == (B, D)

    # Row-tile size: whole batch for small B, 128-row tiles for large batches
    # (full sublanes / MXU rows, bounded VMEM for the [TB, B] logits tiles).
    if B > 128 and B % 128 == 0:
        tile_rows = 128
    else:
        tile_rows = B
    n_tiles = B // tile_rows

    scale_arr = jnp.asarray(logit_scale, jnp.float32).reshape((1,))
    out_dtype = image_features.dtype

    kernel = functools.partial(_clip_loss_kernel, tile_rows=tile_rows, batch=B)

    loss, logits_i, logits_t = pl.pallas_call(
        kernel,
        out_shape=(
            jax.ShapeDtypeStruct((1,), jnp.float32),      # total_loss
            jax.ShapeDtypeStruct((B, B), out_dtype),      # logits_per_image
            jax.ShapeDtypeStruct((B, B), out_dtype),      # logits_per_text
        ),
        grid_spec=pltpu.PrefetchScalarGridSpec(
            num_scalar_prefetch=0,
            grid=(n_tiles,),
            in_specs=[
                pl.BlockSpec(memory_space=pltpu.MemorySpace.SMEM),   # logit_scale
                pl.BlockSpec((B, D), lambda i: (0, 0)),              # image feats (resident)
                pl.BlockSpec((B, D), lambda i: (0, 0)),              # text feats (resident)
            ],
            out_specs=[
                pl.BlockSpec(memory_space=pltpu.MemorySpace.SMEM),   # loss scalar
                pl.BlockSpec((tile_rows, B), lambda i: (i, 0)),      # logits_per_image
                pl.BlockSpec((tile_rows, B), lambda i: (i, 0)),      # logits_per_text
            ],
            scratch_shapes=[pltpu.SMEM((1,), jnp.float32)],          # loss accumulator
        ),
        compiler_params=pltpu.CompilerParams(
            dimension_semantics=("arbitrary",)),   # loss accumulates across row tiles
    )(scale_arr, image_features, text_features)

    return loss[0], logits_i, logits_t


def clip_loss_reference(image_features, text_features, logit_scale):
    """Plain-JAX reference mirroring the PyTorch forward (world_size == 1)."""
    li = logit_scale * image_features @ text_features.T
    lt = logit_scale * text_features @ image_features.T
    n = li.shape[0]
    idx = jnp.arange(n)

    def ce(logits):
        logits = logits.astype(jnp.float32)
        lse = jax.nn.logsumexp(logits, axis=-1)
        tgt = logits[idx, idx]
        return jnp.mean(lse - tgt)

    loss = 0.5 * (ce(li) + ce(lt))
    return loss, li, lt


if __name__ == "__main__":
    # Small config consistent with the module: per-device batch 8, feature dim 32.
    B, D = 8, 32

    key = jax.random.PRNGKey(0)
    ki, kt = jax.random.split(key)
    img = jax.random.normal(ki, (B, D), jnp.float32)
    txt = jax.random.normal(kt, (B, D), jnp.float32)
    # CLIP-style inputs: L2-normalized features, logit_scale = 1 / 0.07.
    img = img / jnp.linalg.norm(img, axis=-1, keepdims=True)
    txt = txt / jnp.linalg.norm(txt, axis=-1, keepdims=True)
    logit_scale = jnp.float32(1.0 / 0.07)

    loss, logits_i, logits_t = clip_loss_pallas(img, txt, logit_scale)
    jax.block_until_ready((loss, logits_i, logits_t))

    ref_loss, ref_li, ref_lt = clip_loss_reference(img, txt, logit_scale)
    assert logits_i.shape == (B, B) and logits_t.shape == (B, B)
    assert jnp.allclose(logits_i, ref_li, atol=1e-4, rtol=1e-4), "logits_per_image mismatch"
    assert jnp.allclose(logits_t, ref_lt, atol=1e-4, rtol=1e-4), "logits_per_text mismatch"
    assert jnp.allclose(loss, ref_loss, atol=1e-4, rtol=1e-4), "loss mismatch"

    # TODO(synk): world_size > 1 gather_features (dist.all_gather) would need a
    # make_async_remote_copy ring collective; single-device path implemented here.
    print("KERNEL_OK")
</pallas_src>

<mosaic_0001>
module attributes {stable_mosaic.version = 11 : i64} {
  func.func @_clip_loss_kernel(%arg0: i32, %arg1: memref<1xf32, #tpu.memory_space<smem>>, %arg2: memref<8x32xf32, #tpu.memory_space<vmem>>, %arg3: memref<8x32xf32, #tpu.memory_space<vmem>>, %arg4: memref<1xf32, #tpu.memory_space<smem>>, %arg5: memref<8x8xf32, #tpu.memory_space<vmem>>, %arg6: memref<8x8xf32, #tpu.memory_space<vmem>>, %arg7: memref<1xf32, #tpu.memory_space<smem>>) attributes {dimension_semantics = [#tpu.dimension_semantics<arbitrary>], iteration_bounds = array<i64: 1>, scalar_prefetch = 0 : i64, scratch_operands = 1 : i64, tpu.core_type = #tpu.core_type<tc>, window_params = [{transform_indices = @transform_0, window_bounds = array<i64: 1>}, {pipeline_mode = #tpu.pipeline_mode<synchronous>, transform_indices = @transform_1, window_bounds = array<i64: 8, 32>}, {pipeline_mode = #tpu.pipeline_mode<synchronous>, transform_indices = @transform_2, window_bounds = array<i64: 8, 32>}, {transform_indices = @transform_3, window_bounds = array<i64: 1>}, {transform_indices = @transform_4, window_bounds = array<i64: 8, 8>}, {transform_indices = @transform_5, window_bounds = array<i64: 8, 8>}]} {
    %c8_i32 = arith.constant 8 : i32
    %0 = arith.muli %arg0, %c8_i32 : i32
    %1 = tpu.assume_multiple %0, 8 : i32
    %c0 = arith.constant 0 : index
    %2 = memref.load %arg1[%c0] : memref<1xf32, #tpu.memory_space<smem>>
    %c0_0 = arith.constant 0 : index
    %c0_1 = arith.constant 0 : index
    %3 = vector.load %arg2[%c0_0, %c0_1] : memref<8x32xf32, #tpu.memory_space<vmem>>, vector<8x32xf32>
    %c0_2 = arith.constant 0 : index
    %c0_3 = arith.constant 0 : index
    %4 = vector.load %arg3[%c0_2, %c0_3] : memref<8x32xf32, #tpu.memory_space<vmem>>, vector<8x32xf32>
    %5 = arith.index_cast %1 : i32 to index
    %c0_4 = arith.constant 0 : index
    %6 = vector.load %arg2[%5, %c0_4] : memref<8x32xf32, #tpu.memory_space<vmem>>, vector<8x32xf32>
    %7 = vector.broadcast %2 : f32 to vector<8x32xf32>
    %8 = arith.mulf %6, %7 : vector<8x32xf32>
    %9 = arith.index_cast %1 : i32 to index
    %c0_5 = arith.constant 0 : index
    %10 = vector.load %arg3[%9, %c0_5] : memref<8x32xf32, #tpu.memory_space<vmem>>, vector<8x32xf32>
    %11 = vector.broadcast %2 : f32 to vector<8x32xf32>
    %12 = arith.mulf %10, %11 : vector<8x32xf32>
    "tpu.trace_start"() <{level = 10 : i32, message = "md,nd->mn"}> : () -> ()
    %cst = arith.constant dense<0.000000e+00> : vector<8x8xf32>
    %13 = tpu.matmul %8, %4, %cst {dimension_numbers = #tpu.dot_dimension_numbers<[1], [1], [0], [0], [0, 0, 1, 0], [], []>} : vector<8x32xf32>, vector<8x32xf32>, vector<8x8xf32> -> vector<8x8xf32>
    %cst_6 = arith.constant dense<0.000000e+00> : vector<8x8xf32>
    %14 = tpu.matmul %12, %3, %cst_6 {dimension_numbers = #tpu.dot_dimension_numbers<[1], [1], [0], [0], [0, 0, 1, 0], [], []>} : vector<8x32xf32>, vector<8x32xf32>, vector<8x8xf32> -> vector<8x8xf32>
    "tpu.trace_stop"() : () -> ()
    %c0_7 = arith.constant 0 : index
    %c0_8 = arith.constant 0 : index
    %15 = vector.load %arg5[%c0_7, %c0_8] : memref<8x8xf32, #tpu.memory_space<vmem>>, vector<8x8xf32>
    tpu.vector_store %arg5[%c0_7, %c0_8], %13 {strides = array<i32>} : memref<8x8xf32, #tpu.memory_space<vmem>>, vector<8x8xf32>,
    %c0_9 = arith.constant 0 : index
    %c0_10 = arith.constant 0 : index
    %16 = vector.load %arg6[%c0_9, %c0_10] : memref<8x8xf32, #tpu.memory_space<vmem>>, vector<8x8xf32>
    tpu.vector_store %arg6[%c0_9, %c0_10], %14 {strides = array<i32>} : memref<8x8xf32, #tpu.memory_space<vmem>>, vector<8x8xf32>,
    %17 = tpu.iota {dimensions = array<i32: 1>} : vector<8x8xi32>
    %18 = tpu.iota {dimensions = array<i32: 0>} : vector<8x8xi32>
    %19 = vector.broadcast %1 : i32 to vector<8x8xi32>
    %20 = arith.addi %18, %19 : vector<8x8xi32>
    %21 = arith.cmpi eq, %17, %20 : vector<8x8xi32>
    %cst_11 = arith.constant dense<0xFF800000> : vector<8xf32>
    %22 = vector.multi_reduction <maximumf>, %13, %cst_11 [1] : vector<8x8xf32> to vector<8xf32>
    %23 = vector.shape_cast %22 : vector<8xf32> to vector<8x1xf32>
    %24 = vector.broadcast %23 : vector<8x1xf32> to vector<8x8xf32>
    %25 = arith.subf %13, %24 : vector<8x8xf32>
    %26 = math.exp %25 : vector<8x8xf32>
    %cst_12 = arith.constant dense<0.000000e+00> : vector<8xf32>
    %27 = vector.multi_reduction <add>, %26, %cst_12 [1] : vector<8x8xf32> to vector<8xf32>
    %28 = vector.shape_cast %27 : vector<8xf32> to vector<8x1xf32>
    %29 = math.log %28 : vector<8x1xf32>
    %30 = arith.addf %23, %29 : vector<8x1xf32>
    %cst_13 = arith.constant 0.000000e+00 : f32
    %31 = vector.broadcast %cst_13 : f32 to vector<8x8xf32>
    %32 = arith.select %21, %13, %31 : vector<8x8xi1>, vector<8x8xf32>
    %cst_14 = arith.constant dense<0.000000e+00> : vector<8xf32>
    %33 = vector.multi_reduction <add>, %32, %cst_14 [1] : vector<8x8xf32> to vector<8xf32>
    %34 = vector.shape_cast %33 : vector<8xf32> to vector<8x1xf32>
    %35 = arith.subf %30, %34 : vector<8x1xf32>
    %36 = vector.shape_cast %35 : vector<8x1xf32> to vector<1x8x1xf32>
    %cst_15 = arith.constant dense<0.000000e+00> : vector<1xf32>
    %37 = vector.multi_reduction <add>, %36, %cst_15 [1, 2] : vector<1x8x1xf32> to vector<1xf32>
    %38 = vector.shape_cast %37 : vector<1xf32> to vector<1x1x1xf32>
    %39 = vector.extract %38[0, 0, 0] : f32 from vector<1x1x1xf32>
    %cst_16 = arith.constant dense<0xFF800000> : vector<8xf32>
    %40 = vector.multi_reduction <maximumf>, %14, %cst_16 [1] : vector<8x8xf32> to vector<8xf32>
    %41 = vector.shape_cast %40 : vector<8xf32> to vector<8x1xf32>
    %42 = vector.broadcast %41 : vector<8x1xf32> to vector<8x8xf32>
    %43 = arith.subf %14, %42 : vector<8x8xf32>
    %44 = math.exp %43 : vector<8x8xf32>
    %cst_17 = arith.constant dense<0.000000e+00> : vector<8xf32>
    %45 = vector.multi_reduction <add>, %44, %cst_17 [1] : vector<8x8xf32> to vector<8xf32>
    %46 = vector.shape_cast %45 : vector<8xf32> to vector<8x1xf32>
    %47 = math.log %46 : vector<8x1xf32>
    %48 = arith.addf %41, %47 : vector<8x1xf32>
    %cst_18 = arith.constant 0.000000e+00 : f32
    %49 = vector.broadcast %cst_18 : f32 to vector<8x8xf32>
    %50 = arith.select %21, %14, %49 : vector<8x8xi1>, vector<8x8xf32>
    %cst_19 = arith.constant dense<0.000000e+00> : vector<8xf32>
    %51 = vector.multi_reduction <add>, %50, %cst_19 [1] : vector<8x8xf32> to vector<8xf32>
    %52 = vector.shape_cast %51 : vector<8xf32> to vector<8x1xf32>
    %53 = arith.subf %48, %52 : vector<8x1xf32>
    %54 = vector.shape_cast %53 : vector<8x1xf32> to vector<1x8x1xf32>
    %cst_20 = arith.constant dense<0.000000e+00> : vector<1xf32>
    %55 = vector.multi_reduction <add>, %54, %cst_20 [1, 2] : vector<1x8x1xf32> to vector<1xf32>
    %56 = vector.shape_cast %55 : vector<1xf32> to vector<1x1x1xf32>
    %57 = vector.extract %56[0, 0, 0] : f32 from vector<1x1x1xf32>
    %58 = arith.addf %39, %57 : f32
    %c0_i32 = arith.constant 0 : i32
    %59 = arith.cmpi eq, %arg0, %c0_i32 : i32
    %60 = arith.extui %59 : i1 to i32
    %c0_i32_21 = arith.constant 0 : i32
    %61 = arith.cmpi ne, %60, %c0_i32_21 : i32
    scf.if %61 {
      %cst_26 = arith.constant 0.000000e+00 : f32
      %c0_27 = arith.constant 0 : index
      %68 = memref.load %arg7[%c0_27] : memref<1xf32, #tpu.memory_space<smem>>
      memref.store %cst_26, %arg7[%c0_27] : memref<1xf32, #tpu.memory_space<smem>>
    } else {
    }
    %c0_22 = arith.constant 0 : index
    %62 = memref.load %arg7[%c0_22] : memref<1xf32, #tpu.memory_space<smem>>
    %63 = arith.addf %62, %58 : f32
    %c0_23 = arith.constant 0 : index
    %64 = memref.load %arg7[%c0_23] : memref<1xf32, #tpu.memory_space<smem>>
    memref.store %63, %arg7[%c0_23] : memref<1xf32, #tpu.memory_space<smem>>
    %c0_i32_24 = arith.constant 0 : i32
    %65 = arith.cmpi eq, %arg0, %c0_i32_24 : i32
    %66 = arith.extui %65 : i1 to i32
    %c0_i32_25 = arith.constant 0 : i32
    %67 = arith.cmpi ne, %66, %c0_i32_25 : i32
    scf.if %67 {
      %c0_26 = arith.constant 0 : index
      %68 = memref.load %arg7[%c0_26] : memref<1xf32, #tpu.memory_space<smem>>
      %cst_27 = arith.constant 6.250000e-02 : f32
      %69 = arith.mulf %68, %cst_27 : f32
      %c0_28 = arith.constant 0 : index
      %70 = memref.load %arg4[%c0_28] : memref<1xf32, #tpu.memory_space<smem>>
      memref.store %69, %arg4[%c0_28] : memref<1xf32, #tpu.memory_space<smem>>
    } else {
    }
    return
  }
  func.func @transform_0(%arg0: i32) -> i32 {
    %c0_i32 = arith.constant 0 : i32
    %c0_i32_0 = arith.constant 0 : i32
    return %c0_i32 : i32
  }
  func.func @transform_1(%arg0: i32) -> (i32, i32) {
    %c0_i32 = arith.constant 0 : i32
    %c0_i32_0 = arith.constant 0 : i32
    %c0_i32_1 = arith.constant 0 : i32
    return %c0_i32, %c0_i32_0 : i32, i32
  }
  func.func @transform_2(%arg0: i32) -> (i32, i32) {
    %c0_i32 = arith.constant 0 : i32
    %c0_i32_0 = arith.constant 0 : i32
    %c0_i32_1 = arith.constant 0 : i32
    return %c0_i32, %c0_i32_0 : i32, i32
  }
  func.func @transform_3(%arg0: i32) -> i32 {
    %c0_i32 = arith.constant 0 : i32
    %c0_i32_0 = arith.constant 0 : i32
    return %c0_i32 : i32
  }
  func.func @transform_4(%arg0: i32) -> (i32, i32) {
    %c0_i32 = arith.constant 0 : i32
    %c0_i32_0 = arith.constant 0 : i32
    return %arg0, %c0_i32 : i32, i32
  }
  func.func @transform_5(%arg0: i32) -> (i32, i32) {
    %c0_i32 = arith.constant 0 : i32
    %c0_i32_0 = arith.constant 0 : i32
    return %arg0, %c0_i32 : i32, i32
  }
}

</mosaic_0001>

<bundles_post_ra>
// kernel: tpu_custom_call.1
= control target key start
LH: loop header
LB: loop body
LE: loop exit
PB: predicated region body
PF: predicated region fallthrough
CT: control target
= control target key end

     0   :  { %12 = vsyncpa [#allocation5], 0  ;;  %s535_s0 = inlined_call_operand.<no memory space> [shape: f32[1], index: 0, kind: input, shape index: {}]   ;;  %s536_s1 = inlined_call_operand.hbm [shape: f32[8,32], index: 1, kind: input, shape index: {}]   ;;  %s537_s2 = inlined_call_operand.hbm [shape: f32[8,32], index: 2, kind: input, shape index: {}]   ;;  %s538_s3 = inlined_call_operand.hbm [shape: f32[1], index: 3, kind: output, shape index: {0}]   ;;  %s539_s4 = inlined_call_operand.hbm [shape: f32[8,8], index: 4, kind: output, shape index: {1}]   ;;  %s540_s5 = inlined_call_operand.hbm [shape: f32[8,8], index: 5, kind: output, shape index: {2}]  }
   0x1   :  { %13 = vsyncpa [#allocation9], 0 }
   0x2   :  { %14 = vsyncpa [#allocation7], 0 }
   0x3   :  { %15 = vsyncpa [#allocation6], 0 }
   0x4   :  { %16 = vsyncpa [#allocation13], 0  ;;  %s470_s18 = smov [#allocation4]   ;;  %s471_s20 = smov [#allocation8]  }
   0x5   :  { %s25_s19 = sshll.u32 %s470_s18, 4  ;;  %s35_s21 = sshll.u32 %s471_s20, 4  ;;  %s26_s19 = int_to_ptr.vmem [resolvable:$true] %s25_s19  ;;  %s36_s21 = int_to_ptr.vmem [resolvable:$true] %s35_s21 }
   0x6   :  { %s380_s22 = scalar_lea.vmem %s26_s19, 128  ;;  %p385_p1 = scmp.lt.s32.totalorder %s26_s19, %s26_s19 }
   0x7   :  { %p381_p0 = scmp.ne.s32.totalorder %s26_s19, %s380_s22  ;;  %p386_p2 = scmp.lt.s32.totalorder %s380_s22, %s380_s22 }
   0x9   :  { %p387_p3 = por %p386_p2, %p385_p1 }
   0xb   :  { %p388_p4 = pnand %p387_p3, %p381_p0 }
   0xd   :  { %391 = shalt.err (!%p388_p4)
}
   0xe   :  { %28 = dma.hbm_to_vmem [thread:$0]  %s536_s1, 128, %s26_s19, [#allocation5]  }
   0xf   :  { %s400_s25 = scalar_lea.vmem %s36_s21, 128  ;;  %p405_p6 = scmp.lt.s32.totalorder %s36_s21, %s36_s21 }
  0x10   :  { %p401_p5 = scmp.ne.s32.totalorder %s36_s21, %s400_s25  ;;  %p406_p7 = scmp.lt.s32.totalorder %s400_s25, %s400_s25 }
  0x12   :  { %p407_p8 = por %p406_p7, %p405_p6 }
  0x14   :  { %p408_p9 = pnand %p407_p8, %p401_p5 }
  0x16   :  { %411 = shalt.err (!%p408_p9)
}
  0x17   :  { %38 = dma.hbm_to_vmem [thread:$0]  %s537_s2, 128, %s36_s21, [#allocation9]  }
  0x18   :  { %460 = dma.done.wait [#allocation5], 128  }
  0x19   :  { %461 = vsyncadd [#allocation5], 4294967168 }
  0x1a   :  { %462 = dma.done.wait [#allocation9], 128  }
  0x1b   :  { %463 = vsyncadd [#allocation9], 4294967168  ;;  %v472_v0 = vmov 0.0   ;;  %vm473_vm0 = vmmov 0   ;;  %vm56_vm1 = vcmask 261120   ;;  %v51_v1 = vstv %s535_s0  ;;  %v48_v2 = vld [vmem:[#allocation8] sm:$0xff] }
  0x1c   :  { %343 = vmatprep.subr.mxu0 %v472_v0  ;;  %348 = vmatprep.subr.mxu1 %v472_v0  ;;  %v47_v3 = vld [vmem:[#allocation4] sm:$0xff]  ;;  %v55_v5 = vmul.f32 %v51_v1, %v48_v2  ;;  %v212_v6 = vlaneseq  ;;  %vm209_vm2 = vcmask 64512   ;;  %vm236_vm4 = vcmask 7168   ;;  %s474_s0 = smov [#allocation11]   ;;  %s475_s29 = smov [#allocation12]  }
  0x1d   :  { %345 = vmatprep.mubr.msk.f32.mxu0 %vm473_vm0, %v472_v0  ;;  %350 = vmatprep.mubr.msk.f32.mxu1 %vm473_vm0, %v472_v0  ;;  %v52_v4 = vmul.f32 %v51_v1, %v47_v3  ;;  %s306_s2 = sshll.u32 %s474_s0, 4  ;;  %s316_s30 = sshll.u32 %s475_s29, 4  ;;  %s307_s2 = int_to_ptr.vmem [resolvable:$true] %s306_s2  ;;  %s317_s30 = int_to_ptr.vmem [resolvable:$true] %s316_s30 }
  0x1e   :  { %344 = vmatpush3.xpose.msk.msra.mxu0 %vm56_vm1, %v48_v2  ;;  %349 = vmatpush3.xpose.msk.msra.mxu1 %vm56_vm1, %v47_v3  ;;  %v213_v7 = vand.u32 127, %v212_v6  ;;  %v215_v8 = vshrl.u32 %v212_v6, 7  ;;  %s412_s6 = scalar_lea.vmem %s307_s2, 128  ;;  %p417_p11 = scmp.lt.s32.totalorder %s307_s2, %s307_s2 }
  0x1f   :  { %p413_p10 = scmp.ne.s32.totalorder %s307_s2, %s412_s6  ;;  %p418_p12 = scmp.lt.s32.totalorder %s412_s6, %s412_s6 }
  0x20   :  { %vm218_vm3 = vcmp.eq.s32.totalorder %v213_v7, %v215_v8 }
  0x21   :  { %346 = vmatmul.mubr.msk.f32.vlgmr.msra.gmra.mxu0 %vm56_vm1, %v52_v4  ;;  %351 = vmatmul.mubr.msk.f32.vlgmr.msra.gmra.mxu1 %vm56_vm1, %v55_v5  ;;  %p419_p13 = por %p418_p12, %p417_p11 }
  0x23   :  { %p420_p0 = pnand %p419_p13, %p413_p10 }
  0xe1   :  { %v129_v9 = vpop.f32.mrf.mxu0  ;;  %v205_v10 = vpop.f32.mrf.mxu1 }
  0xe2   :  { %v219_v11 = vsel %vm209_vm2, %v129_v9, -inf  ;;  %210 = vst.msk [vmem:[#allocation11] sm:$0xff] %vm209_vm2, %v129_v9  ;;  %211 = vst.msk [vmem:[#allocation12] sm:$0xff] %vm209_vm2, %v205_v10  ;;  %v247_v14 = vsel %vm209_vm2, %v205_v10, -inf  ;;  %v231_v15 = vsel %vm218_vm3, %v129_v9, 0.0  ;;  %v259_v27 = vsel %vm218_vm3, %v205_v10, 0.0 }
  0xe3   :  { %220 = vmax.xlane.f32.xlu0 %v219_v11  ;;  %v347_v12 = vpop.f32.mrf.mxu0  ;;  %v352_v13 = vpop.f32.mrf.mxu1  ;;  %v232_v16 = vsel %vm209_vm2, %v231_v15, 0.0  ;;  %v260_v28 = vsel %vm209_vm2, %v259_v27, 0.0 }
  0xe7   :  { %248 = vmax.xlane.f32.xlu0 %v247_v14 }
  0xeb   :  { %233 = vadd.xlane.f32.xlu0 %v232_v16 }
 0x16c   :  { %v221_v17 = vpop.xlane.xlu0 %220 }
 0x16d   :  { %v222_v18 = vsub.f32 %v129_v9, %v221_v17 }
 0x16f   :  { %v223_v19 = vmul.f32 1.442695, %v222_v18 }
 0x170   :  { %v249_v20 = vpop.xlane.xlu0 %248 }
 0x171   :  { %364 = vpow2.f32 %v223_v19  ;;  %v250_v21 = vsub.f32 %v205_v10, %v249_v20 }
 0x173   :  { %v251_v22 = vmul.f32 1.442695, %v250_v21 }
 0x174   :  { %v234_v35 = vpop.xlane.xlu0 %233 }
 0x175   :  { %366 = vpow2.f32 %v251_v22 }
 0x17e   :  { %v365_v23 = vpop.eup %364 }
 0x17f   :  { %v225_v24 = vsel %vm209_vm2, %v365_v23, 0.0 }
 0x180   :  { %226 = vadd.xlane.f32.xlu1 %v225_v24 }
 0x182   :  { %v367_v25 = vpop.eup %366 }
 0x183   :  { %v253_v26 = vsel %vm209_vm2, %v367_v25, 0.0 }
 0x184   :  { %254 = vadd.xlane.f32.xlu1 %v253_v26 }
 0x188   :  { %261 = vadd.xlane.f32.xlu1 %v260_v28 }
 0x209   :  { %v227_v29 = vpop.xlane.xlu1 %226 }
 0x20a   :  { %368 = vlog2.f32 %v227_v29 }
 0x20d   :  { %v255_v30 = vpop.xlane.xlu1 %254 }
 0x20e   :  { %370 = vlog2.f32 %v255_v30 }
 0x211   :  { %v262_v40 = vpop.xlane.xlu1 %261 }
 0x217   :  { %v369_v31 = vpop.eup %368 }
 0x218   :  { %v229_v32 = vmul.f32 0.6931472, %v369_v31 }
 0x21a   :  { %v230_v33 = vadd.f32 %v229_v32, %v221_v17 }
 0x21b   :  { %v371_v34 = vpop.eup %370 }
 0x21c   :  { %v257_v36 = vmul.f32 0.6931472, %v371_v34  ;;  %v235_v37 = vsub.f32 %v230_v33, %v234_v35 }
 0x21e   :  { %v258_v38 = vadd.f32 %v257_v36, %v249_v20  ;;  %v237_v39 = vsel %vm236_vm4, %v235_v37, 0.0 }
 0x21f   :  { %238 = vadd.xlane.f32.xlu0 %v237_v39 }
 0x220   :  { %v263_v41 = vsub.f32 %v258_v38, %v262_v40 }
 0x222   :  { %v264_v42 = vsel %vm236_vm4, %v263_v41, 0.0 }
 0x223   :  { %265 = vadd.xlane.f32.xlu1 %v264_v42 }
 0x224   :  { %423 = shalt.err (!%p420_p0)
}
 0x225   :  { %309 = dma.vmem_to_hbm [thread:$0]  %s307_s2, 128, %s539_s4, [#allocation6]  }
 0x226   :  { %s432_s9 = scalar_lea.vmem %s317_s30, 128  ;;  %p437_p2 = scmp.lt.s32.totalorder %s317_s30, %s317_s30 }
 0x227   :  { %p433_p1 = scmp.ne.s32.totalorder %s317_s30, %s432_s9  ;;  %p438_p3 = scmp.lt.s32.totalorder %s432_s9, %s432_s9 }
 0x229   :  { %p439_p4 = por %p438_p3, %p437_p2 }
 0x22b   :  { %p440_p5 = pnand %p439_p4, %p433_p1 }
 0x22d   :  { %443 = shalt.err (!%p440_p5)
}
 0x22e   :  { %319 = dma.vmem_to_hbm [thread:$0]  %s317_s30, 128, %s540_s5, [#allocation13]  }
 0x22f   :  { %s476_s14 = smov [#allocation10]  }
 0x2a8   :  { %v239_v43 = vpop.xlane.xlu0 %238 }
 0x2a9   :  { %v240_v44 = vrot.slane %v239_v43, 4 }
 0x2ab   :  { %v241_v45 = vadd.f32 %v240_v44, %v239_v43 }
 0x2ac   :  { %v266_v46 = vpop.xlane.xlu1 %265 }
 0x2ad   :  { %v242_v47 = vrot.slane %v241_v45, 2  ;;  %v267_v48 = vrot.slane %v266_v46, 4 }
 0x2af   :  { %v268_v49 = vadd.f32 %v267_v48, %v266_v46  ;;  %v243_v50 = vadd.f32 %v242_v47, %v241_v45 }
 0x2b1   :  { %v269_v51 = vrot.slane %v268_v49, 2  ;;  %v244_v52 = vrot.slane %v243_v50, 1 }
 0x2b3   :  { %v270_v53 = vadd.f32 %v269_v51, %v268_v49  ;;  %v245_v54 = vadd.f32 %v244_v52, %v243_v50 }
 0x2b5   :  { %353 = vpush %v245_v54  ;;  %v271_v55 = vrot.slane %v270_v53, 1 }
 0x2b7   :  { %v272_v56 = vadd.f32 %v271_v55, %v270_v53 }
 0x2b9   :  { %355 = vpush %v272_v56 }
 0x2e6   :  { %s354_s4 = spop %353 }
 0x2ea   :  { %s356_s12 = spop %355 }
 0x2eb   :  { %s274_s13 = sadd.f32 %s356_s12, %s354_s4 }
 0x2ed   :  { %s289_s5 = smul.f32 0.0625, %s274_s13 }
 0x2ef   :  { %291 = sst [smem:[#allocation10]] %s289_s5 }
 0x2f0   :  { %299 = dma.smem_to_hbm %s476_s14, 16, %s538_s3, [#allocation7]  }
 0x2f1   :  { %464 = dma.done.wait [#allocation7], 16  }
 0x2f2   :  { %465 = vsyncadd [#allocation7], 4294967280 }
 0x2f3   :  { %466 = dma.done.wait [#allocation6], 128  }
 0x2f4   :  { %467 = vsyncadd [#allocation6], 4294967168 }
 0x2f5   :  { %468 = dma.done.wait [#allocation13], 128  }
 0x2f6   :  { %469 = vsyncadd [#allocation13], 4294967168 }
 0x2f7   :  { %329 = sfence }
 0x2f8   :  { %330 = vsyncpa [#allocation5], 1 }
 0x2f9   :  { %331 = vsyncpa [#allocation9], 1 }
 0x2fa   :  { %332 = vsyncpa [#allocation6], 1 }
 0x2fb   :  { %333 = vsyncpa [#allocation13], 1 }
 0x2fc   :  { %334 = vsyncpa [#allocation7], 1 }

</bundles_post_ra>
